<compile_context>
chip_gen: v7x
topology: tpu7x:2x2x1
jax: 0.10.0
libtpu: 0.0.40
codegen_flags: <defaults>
</compile_context>

<pallas_src>
import math

import jax
import jax.numpy as jnp
from jax.experimental import pallas as pl
from jax.experimental.pallas import tpu as pltpu


# ---------------------------------------------------------------------------
# Kernels
# ---------------------------------------------------------------------------
def _add_pe_3d_kernel(x_ref, pe_ref, o_ref):
    # x_ref: (sb, B, D); pe_ref: (sb, 1, D) -> broadcast add over batch.
    o_ref[...] = (x_ref[...] + pe_ref[...]).astype(o_ref.dtype)


def _add_pe_2d_kernel(x_ref, pe_ref, o_ref):
    # x_ref, pe_ref, o_ref: (sb, B*D) -- lane/sublane-dense flat add.
    o_ref[...] = (x_ref[...] + pe_ref[...]).astype(o_ref.dtype)


# ---------------------------------------------------------------------------
# PE table (replicates the PyTorch buffer construction for the first S rows)
# ---------------------------------------------------------------------------
def _build_pe_2d(seq_len, d_model, dtype):
    position = jnp.arange(seq_len, dtype=jnp.float32)[:, None]                 # (S, 1)
    div_term = jnp.exp(
        jnp.arange(0, d_model, 2, dtype=jnp.float32) * (-math.log(10000.0) / d_model)
    )                                                                           # (D/2,)
    angles = position * div_term                                                # (S, D/2)
    pe = jnp.zeros((seq_len, d_model), jnp.float32)
    pe = pe.at[:, 0::2].set(jnp.sin(angles))
    pe = pe.at[:, 1::2].set(jnp.cos(angles))
    return pe.astype(dtype)                                                     # (S, D)


# ---------------------------------------------------------------------------
# Tile sizing: biggest seq tile with slab ~target_bytes, multiple of 8 rows,
# and >= 2 grid steps when S >= 16 (v7x dual-TensorCore sharding).
# ---------------------------------------------------------------------------
def _choose_seq_block(S, row_bytes, target_bytes=4 << 20):
    rows = max(1, target_bytes // max(1, row_bytes))
    sb = min(S, rows)
    if S >= 16:
        half = -(-S // 2)               # ceil(S / 2)
        half = -(-half // 8) * 8        # round up to a multiple of 8
        sb = min(sb, half)
    if sb >= 8:
        sb -= sb % 8
    return max(1, sb)


# ---------------------------------------------------------------------------
# Wrapper
# ---------------------------------------------------------------------------
def positional_encoding(x, d_model=None):
    """x: (S, B, D). Returns x + PE[:S] broadcast over the batch axis (dropout p=0)."""
    S, B, D = x.shape
    if d_model is None:
        d_model = D
    assert D == d_model and d_model % 2 == 0

    pe2d = _build_pe_2d(S, d_model, dtype=x.dtype)              # (S, D), x.dtype

    compiler_params = pltpu.CompilerParams(
        dimension_semantics=("parallel",),
        vmem_limit_bytes=32 << 20,
    )
    row_bytes = B * D * x.dtype.itemsize
    sb = _choose_seq_block(S, row_bytes)
    grid = (pl.cdiv(S, sb),)

    if B <= 4:
        # Small-batch path: lane/sublane-dense (S, B*D) view; PE pre-tiled
        # across batch (amortizable, like the registered buffer).
        BD = B * D
        x_flat = x.reshape(S, BD)
        pe_flat = jnp.tile(pe2d, (1, B))                         # (S, B*D)
        out = pl.pallas_call(
            _add_pe_2d_kernel,
            out_shape=jax.ShapeDtypeStruct((S, BD), x.dtype),
            grid=grid,
            in_specs=[
                pl.BlockSpec((sb, BD), lambda i: (i, 0)),        # x tile
                pl.BlockSpec((sb, BD), lambda i: (i, 0)),        # pe tile
            ],
            out_specs=pl.BlockSpec((sb, BD), lambda i: (i, 0)),
            input_output_aliases={0: 0},
            compiler_params=compiler_params,
        )(x_flat, pe_flat)
        return out.reshape(S, B, D)

    # Batched path: contiguous 3D slabs, tiny (S, 1, D) PE side input.
    pe3d = pe2d[:, None, :]                                      # (S, 1, D)
    return pl.pallas_call(
        _add_pe_3d_kernel,
        out_shape=jax.ShapeDtypeStruct((S, B, D), x.dtype),
        grid=grid,
        in_specs=[
            pl.BlockSpec((sb, B, D), lambda i: (i, 0, 0)),       # x tile
            pl.BlockSpec((sb, 1, D), lambda i: (i, 0, 0)),       # pe tile (bcast over B)
        ],
        out_specs=pl.BlockSpec((sb, B, D), lambda i: (i, 0, 0)),
        input_output_aliases={0: 0},
        compiler_params=compiler_params,
    )(x, pe3d)


# ---------------------------------------------------------------------------
# Pure-JAX reference (replica of the PyTorch buffer construction + forward)
# ---------------------------------------------------------------------------
def _reference(x, d_model, max_len=5000):
    position = jnp.arange(0, max_len, dtype=jnp.float32)[:, None]
    div_term = jnp.exp(
        jnp.arange(0, d_model, 2, dtype=jnp.float32) * (-math.log(10000.0) / d_model)
    )
    pe = jnp.zeros((max_len, d_model), jnp.float32)
    pe = pe.at[:, 0::2].set(jnp.sin(position * div_term))
    pe = pe.at[:, 1::2].set(jnp.cos(position * div_term))
    pe = pe[:, None, :]                                          # (max_len, 1, d_model)
    return (x + pe[: x.shape[0], :]).astype(x.dtype)


if __name__ == "__main__":
    key = jax.random.PRNGKey(0)

    # Case 1: small batch (B <= 4) -> flattened lane-dense path.
    S1, B1, D1 = 8, 2, 32
    k1, k2 = jax.random.split(key)
    x1 = jax.random.normal(k1, (S1, B1, D1), dtype=jnp.float32)
    ref1 = _reference(x1, d_model=D1)            # compute before the (aliasing) kernel call
    out1 = jax.block_until_ready(positional_encoding(x1, d_model=D1))
    assert out1.shape == (S1, B1, D1)
    assert jnp.allclose(out1, ref1, atol=1e-5, rtol=1e-5), "mismatch vs reference (small-B path)"

    # Case 2: batched (B >= 8) -> 3D broadcast-add path with a 2-step grid.
    S2, B2, D2 = 16, 8, 32
    x2 = jax.random.normal(k2, (S2, B2, D2), dtype=jnp.float32)
    ref2 = _reference(x2, d_model=D2)
    out2 = jax.block_until_ready(positional_encoding(x2, d_model=D2))
    assert out2.shape == (S2, B2, D2)
    assert jnp.allclose(out2, ref2, atol=1e-5, rtol=1e-5), "mismatch vs reference (batched path)"

    print("KERNEL_OK")
</pallas_src>

<mosaic_0001>
module attributes {stable_mosaic.version = 11 : i64} {
  func.func @_add_pe_2d_kernel(%arg0: i32, %arg1: memref<8x64xf32, #tpu.memory_space<vmem>>, %arg2: memref<8x64xf32, #tpu.memory_space<vmem>>, %arg3: memref<8x64xf32, #tpu.memory_space<vmem>>) attributes {dimension_semantics = [#tpu.dimension_semantics<parallel>], iteration_bounds = array<i64: 1>, scalar_prefetch = 0 : i64, scratch_operands = 0 : i64, tpu.core_type = #tpu.core_type<tc>, window_params = [{transform_indices = @transform_0, window_bounds = array<i64: 8, 64>}, {transform_indices = @transform_1, window_bounds = array<i64: 8, 64>}, {transform_indices = @transform_2, window_bounds = array<i64: 8, 64>}]} {
    %c0 = arith.constant 0 : index
    %c0_0 = arith.constant 0 : index
    %0 = vector.load %arg1[%c0, %c0_0] : memref<8x64xf32, #tpu.memory_space<vmem>>, vector<8x64xf32>
    %c0_1 = arith.constant 0 : index
    %c0_2 = arith.constant 0 : index
    %1 = vector.load %arg2[%c0_1, %c0_2] : memref<8x64xf32, #tpu.memory_space<vmem>>, vector<8x64xf32>
    %2 = arith.addf %0, %1 : vector<8x64xf32>
    %c0_3 = arith.constant 0 : index
    %c0_4 = arith.constant 0 : index
    %3 = vector.load %arg3[%c0_3, %c0_4] : memref<8x64xf32, #tpu.memory_space<vmem>>, vector<8x64xf32>
    tpu.vector_store %arg3[%c0_3, %c0_4], %2 {strides = array<i32>} : memref<8x64xf32, #tpu.memory_space<vmem>>, vector<8x64xf32>,
    return
  }
  func.func @transform_0(%arg0: i32) -> (i32, i32) {
    %c0_i32 = arith.constant 0 : i32
    %c0_i32_0 = arith.constant 0 : i32
    return %arg0, %c0_i32 : i32, i32
  }
  func.func @transform_1(%arg0: i32) -> (i32, i32) {
    %c0_i32 = arith.constant 0 : i32
    %c0_i32_0 = arith.constant 0 : i32
    return %arg0, %c0_i32 : i32, i32
  }
  func.func @transform_2(%arg0: i32) -> (i32, i32) {
    %c0_i32 = arith.constant 0 : i32
    %c0_i32_0 = arith.constant 0 : i32
    return %arg0, %c0_i32 : i32, i32
  }
}

</mosaic_0001>

<bundles_post_ra>
// kernel: tpu_custom_call.1
= control target key start
LH: loop header
LB: loop body
LE: loop exit
PB: predicated region body
PF: predicated region fallthrough
CT: control target
= control target key end

     0   :  { %7 = vsyncpa [#allocation3], 0  ;;  %s138_s0 = inlined_call_operand.hbm [shape: f32[8,64], index: 0, kind: input, shape index: {}, may-alias: {0,2}]   ;;  %s139_s1 = inlined_call_operand.vmem [shape: f32[8,64], index: 1, kind: input, shape index: {}]   ;;  %s140_s2 = inlined_call_operand.hbm [shape: f32[8,64], index: 2, kind: output, shape index: {}, may-alias: {0,2}]  }
   0x1   :  { %8 = vsyncpa [#allocation4], 0  ;;  %s94_s9 = smov [#allocation2]   ;;  %s46_s13 = scalar_lea.hbm %s138_s0, 128 }
   0x2   :  { %s15_s10 = sshll.u32 %s94_s9, 4  ;;  %p47_p0 = scmp.ne.s32.totalorder %s138_s0, %s46_s13  ;;  %s16_s10 = int_to_ptr.vmem [resolvable:$true] %s15_s10 }
   0x3   :  { %p50_p1 = scmp.lt.u32.totalorder %s46_s13, %s138_s0 }
   0x5   :  { %p52_p2 = pnand %p50_p1, %p47_p0 }
   0x7   :  { %55 = shalt.err (!%p52_p2)
}
   0x8   :  { %s56_s18 = scalar_lea.vmem %s16_s10, 128  ;;  %p61_p4 = scmp.lt.s32.totalorder %s16_s10, %s16_s10 }
   0x9   :  { %p57_p3 = scmp.ne.s32.totalorder %s16_s10, %s56_s18  ;;  %p62_p5 = scmp.lt.s32.totalorder %s56_s18, %s56_s18 }
   0xb   :  { %p63_p6 = por %p62_p5, %p61_p4 }
   0xd   :  { %p64_p7 = pnand %p63_p6, %p57_p3 }
   0xf   :  { %67 = shalt.err (!%p64_p7)
}
  0x10   :  { %18 = dma.hbm_to_vmem [thread:$0]  %s138_s0, 128, %s16_s10, [#allocation3]  }
  0x11   :  { %90 = dma.done.wait [#allocation3], 128  }
  0x12   :  { %91 = vsyncadd [#allocation3], 4294967168  ;;  %s95_s21 = smov [#allocation5]   ;;  %v24_v0 = vld [vmem:[#allocation2] sm:$0xff]  ;;  %vm27_vm0 = vcmask 523264  }
  0x13   :  { %s35_s22 = sshll.u32 %s95_s21, 4  ;;  %v25_v1 = vld [vmem:[%s139_s1] sm:$0xff]  ;;  %s36_s22 = int_to_ptr.vmem [resolvable:$true] %s35_s22 }
  0x14   :  { %v26_v2 = vadd.f32 %v25_v1, %v24_v0  ;;  %s68_s25 = scalar_lea.vmem %s36_s22, 128  ;;  %p73_p9 = scmp.lt.s32.totalorder %s36_s22, %s36_s22 }
  0x15   :  { %p69_p8 = scmp.ne.s32.totalorder %s36_s22, %s68_s25  ;;  %p74_p10 = scmp.lt.s32.totalorder %s68_s25, %s68_s25 }
  0x16   :  { %28 = vst.msk [vmem:[#allocation5] sm:$0xff] %vm27_vm0, %v26_v2 }
  0x17   :  { %p75_p11 = por %p74_p10, %p73_p9 }
  0x19   :  { %p76_p12 = pnand %p75_p11, %p69_p8 }
  0x1b   :  { %79 = shalt.err (!%p76_p12)
}
  0x1c   :  { %s80_s27 = scalar_lea.hbm %s140_s2, 128 }
  0x1d   :  { %p81_p13 = scmp.ne.s32.totalorder %s140_s2, %s80_s27  ;;  %p84_p0 = scmp.lt.u32.totalorder %s80_s27, %s140_s2 }
  0x1f   :  { %p86_p1 = pnand %p84_p0, %p81_p13 }
  0x21   :  { %89 = shalt.err (!%p86_p1)
}
  0x22   :  { %38 = dma.vmem_to_hbm [thread:$0]  %s36_s22, 128, %s140_s2, [#allocation4]  }
  0x23   :  { %92 = dma.done.wait [#allocation4], 128  }
  0x24   :  { %93 = vsyncadd [#allocation4], 4294967168 }
  0x25   :  { %42 = vsyncpa [#allocation3], 1 }
  0x26   :  { %43 = vsyncpa [#allocation4], 1 }

</bundles_post_ra>
